<compile_context>
chip_gen: v7x
topology: tpu7x:2x2x1
jax: 0.10.0
libtpu: 0.0.40
codegen_flags: <defaults>
</compile_context>

<pallas_src>
import functools

import jax
import jax.numpy as jnp
from jax.experimental import pallas as pl
from jax.experimental.pallas import tpu as pltpu


# ----------------------------- fused kernel -----------------------------

def _gate(x, w, bn, *, K, pad, c_out, activation):
    """One GatingBlock on a (B, L, C_in) f32 slab kept in VMEM (stride 1, 'same' pad).

    w:  (K, C_in, 2*c_out) bf16 -- [conv1 || conv2] along the last dim
    bn: (2, 2*c_out)       f32  -- row 0: [scale1 || scale2], row 1: [shift1 || shift2]
    """
    B, L, C_in = x.shape
    L_out = L  # stride==1 with pad=(K-1)//2 keeps the length

    if pad > 0:
        z = jnp.zeros((B, pad, C_in), x.dtype)
        xp = jnp.concatenate([z, x, z], axis=1)          # (B, L + 2*pad, C_in)
    else:
        xp = x

    # K-tap accumulation: sublane-shifted slices, one (B*L, C_in)@(C_in, 2*c_out)
    # bf16 MXU matmul per tap, f32 accumulation.
    acc = jnp.zeros((B * L_out, 2 * c_out), jnp.float32)
    for k in range(K):
        xk = xp[:, k:k + L_out, :].reshape(B * L_out, C_in).astype(jnp.bfloat16)
        acc = acc + jnp.dot(xk, w[k], preferred_element_type=jnp.float32)

    y = acc * bn[0:1, :] + bn[1:2, :]                    # folded BatchNorm (f32)

    # sigmoid = 1 / (1 + exp(-x)): exp on EUP, approx reciprocal on EUP (frees VALU).
    gate = pl.reciprocal(1.0 + jnp.exp(-y[:, :c_out]), approx=True)
    val = y[:, c_out:]
    if activation is not None:
        val = activation(val)
    return (gate * val).reshape(B, L_out, c_out)


def _bottleneck_kernel(x_ref, w1_ref, bn1_ref, w2_ref, bn2_ref, w3_ref, bn3_ref,
                       o_ref, *, planes, expansion, activation):
    """B_TILE batch elements: gb1 -> gb2 -> gb3 (+ residual), intermediates VMEM-resident."""
    x = x_ref[...].astype(jnp.float32)                   # (B_TILE, L, C_in)
    h = _gate(x, w1_ref[...], bn1_ref[...],
              K=3, pad=1, c_out=planes, activation=activation)
    h = _gate(h, w2_ref[...], bn2_ref[...],
              K=9, pad=4, c_out=planes, activation=activation)
    h = _gate(h, w3_ref[...], bn3_ref[...],
              K=3, pad=1, c_out=planes * expansion, activation=activation)
    # downsample is None -> residual is the raw input, fused here.
    o_ref[...] = (h + x).astype(o_ref.dtype)


# ----------------------------- wrappers -----------------------------

def _pick_batch_tile(n, l, target_rows=256):
    """Batch elements per grid step: fill the MXU M dim if possible, else keep >=2
    grid steps so both v7x TensorCores get work (the batch axis is 'parallel')."""
    divs = [d for d in range(1, n + 1) if n % d == 0]
    for d in divs:                       # smallest tile reaching the M target
        if d * l >= target_rows:
            return d
    for d in reversed(divs):             # can't fill M: prefer >=2 megacore steps
        if n // d >= 2:
            return d
    return n


def bottleneck_forward_nlc(x_nlc, params, *, stride=1, activation=None):
    """x_nlc: (N, L, C_in) f32 channels-last. Returns (N, L, planes*expansion)."""
    N, L, C_in = x_nlc.shape
    w1, bn1 = params["gb1"]
    w2, bn2 = params["gb2"]
    w3, bn3 = params["gb3"]
    planes = bn1.shape[-1] // 2
    C_out = bn3.shape[-1] // 2
    expansion = C_out // planes
    assert stride == 1 and C_out == C_in, (
        "downsample=None requires stride==1 and planes*expansion==inplanes")

    # bf16 operands for the MXU (accumulation stays f32 inside the kernel).
    w1b, w2b, w3b = (w.astype(jnp.bfloat16) for w in (w1, w2, w3))

    B_TILE = _pick_batch_tile(N, L)
    grid = (N // B_TILE,)

    kernel = functools.partial(
        _bottleneck_kernel, planes=planes, expansion=expansion, activation=activation)

    return pl.pallas_call(
        kernel,
        out_shape=jax.ShapeDtypeStruct((N, L, C_out), x_nlc.dtype),
        grid=grid,
        in_specs=[
            pl.BlockSpec((B_TILE, L, C_in), lambda b: (b, 0, 0)),
            pl.BlockSpec(w1b.shape, lambda b: (0, 0, 0)),
            pl.BlockSpec(bn1.shape, lambda b: (0, 0)),
            pl.BlockSpec(w2b.shape, lambda b: (0, 0, 0)),
            pl.BlockSpec(bn2.shape, lambda b: (0, 0)),
            pl.BlockSpec(w3b.shape, lambda b: (0, 0, 0)),
            pl.BlockSpec(bn3.shape, lambda b: (0, 0)),
        ],
        out_specs=pl.BlockSpec((B_TILE, L, C_out), lambda b: (b, 0, 0)),
        compiler_params=pltpu.CompilerParams(
            dimension_semantics=("parallel",),
            vmem_limit_bytes=32 * 1024 * 1024),
    )(x_nlc, w1b, bn1, w2b, bn2, w3b, bn3)


def bottleneck_forward(x_ncl, params, *, stride=1, activation=None):
    """PyTorch NCL interface (transposes at the boundary only)."""
    x = jnp.transpose(x_ncl, (0, 2, 1))            # NCL -> NLC
    out = bottleneck_forward_nlc(x, params, stride=stride, activation=activation)
    return jnp.transpose(out, (0, 2, 1))           # NLC -> NCL


# ----------------------------- parameter construction -----------------------------

def _make_bn(key, c_out, eps=1e-5):
    kg, kb, km, kv = jax.random.split(key, 4)
    gamma = jax.random.uniform(kg, (c_out,), jnp.float32, 0.5, 1.5)
    beta = 0.1 * jax.random.normal(kb, (c_out,), jnp.float32)
    mean = 0.1 * jax.random.normal(km, (c_out,), jnp.float32)
    var = jax.random.uniform(kv, (c_out,), jnp.float32, 0.5, 1.5)
    scale = gamma / jnp.sqrt(var + eps)
    shift = beta - mean * scale
    return scale, shift                             # each (c_out,)


def make_gating_params(key, c_in, c_out, K):
    k1, k2, k3, k4 = jax.random.split(key, 4)
    bound = (1.0 / (c_in * K)) ** 0.5
    # conv weights in WIO layout (PyTorch Conv1d weight is (C_out, C_in, K))
    w1 = jax.random.uniform(k1, (K, c_in, c_out), jnp.float32, -bound, bound)
    w2 = jax.random.uniform(k2, (K, c_in, c_out), jnp.float32, -bound, bound)
    s1, b1 = _make_bn(k3, c_out)
    s2, b2 = _make_bn(k4, c_out)
    # kernel layout: per-tap weight (K, C_in, 2*C_out) = [conv1 || conv2]
    w_packed = jnp.concatenate([w1, w2], axis=-1)
    # packed folded BN: (2, 2*C_out) = [[s1||s2], [b1||b2]]
    bn_packed = jnp.stack([jnp.concatenate([s1, s2]),
                           jnp.concatenate([b1, b2])], axis=0)
    packed = (w_packed, bn_packed)
    raw = (w1, (s1, b1), w2, (s2, b2))
    return packed, raw


def make_bottleneck_params(key, inplanes, planes, expansion=4):
    k1, k2, k3 = jax.random.split(key, 3)
    p1, r1 = make_gating_params(k1, inplanes, planes, 3)
    p2, r2 = make_gating_params(k2, planes, planes, 9)
    p3, r3 = make_gating_params(k3, planes, planes * expansion, 3)
    packed = {"gb1": p1, "gb2": p2, "gb3": p3}
    raw = {"gb1": r1, "gb2": r2, "gb3": r3}
    return packed, raw


# ----------------------------- pure-JAX reference -----------------------------

def _conv1d_ref(x_nlc, w_kio, stride, pad):
    return jax.lax.conv_general_dilated(
        x_nlc, w_kio, window_strides=(stride,), padding=[(pad, pad)],
        dimension_numbers=("NWC", "WIO", "NWC"))


def _gating_ref(x, w1, bn1, w2, bn2, K, stride, pad, activation=None):
    o1 = jax.nn.sigmoid(_conv1d_ref(x, w1, stride, pad) * bn1[0] + bn1[1])
    o2 = _conv1d_ref(x, w2, stride, pad) * bn2[0] + bn2[1]
    if activation is not None:
        o2 = activation(o2)
    return o1 * o2


def bottleneck_ref(x_ncl, raw_params, *, stride=1, activation=None):
    x = jnp.transpose(x_ncl, (0, 2, 1))
    out = _gating_ref(x, *raw_params["gb1"], 3, 1, 1, activation)
    out = _gating_ref(out, *raw_params["gb2"], 9, stride, 4, activation)
    out = _gating_ref(out, *raw_params["gb3"], 3, 1, 1, activation)
    out = out + x
    return jnp.transpose(out, (0, 2, 1))


if __name__ == "__main__":
    # Bottleneck(inplanes=16, planes=4, stride=1, activation=None, downsample=None)
    # -> residual add requires planes*expansion == inplanes.
    N, inplanes, planes, L = 2, 16, 4, 16
    key = jax.random.PRNGKey(0)
    kx, kp = jax.random.split(key)
    x = jax.random.normal(kx, (N, inplanes, L), jnp.float32)   # PyTorch NCL layout
    packed_params, raw_params = make_bottleneck_params(kp, inplanes, planes)

    out = jax.block_until_ready(
        bottleneck_forward(x, packed_params, stride=1, activation=None))
    ref = jax.block_until_ready(
        bottleneck_ref(x, raw_params, stride=1, activation=None))

    assert out.shape == (N, inplanes, L), out.shape
    # bf16 MXU operands (f32 accumulation) -> loosened tolerance vs. the f32 reference.
    assert jnp.allclose(out, ref, rtol=2e-2, atol=2e-2), float(jnp.max(jnp.abs(out - ref)))
    print("KERNEL_OK")
</pallas_src>

<mosaic_0001>
module attributes {stable_mosaic.version = 11 : i64} {
  func.func @_bottleneck_kernel(%arg0: i32, %arg1: memref<1x16x16xf32, #tpu.memory_space<vmem>>, %arg2: memref<3x16x8xbf16, #tpu.memory_space<vmem>>, %arg3: memref<2x8xf32, #tpu.memory_space<vmem>>, %arg4: memref<9x4x8xbf16, #tpu.memory_space<vmem>>, %arg5: memref<2x8xf32, #tpu.memory_space<vmem>>, %arg6: memref<3x4x32xbf16, #tpu.memory_space<vmem>>, %arg7: memref<2x32xf32, #tpu.memory_space<vmem>>, %arg8: memref<1x16x16xf32, #tpu.memory_space<vmem>>) attributes {dimension_semantics = [#tpu.dimension_semantics<parallel>], iteration_bounds = array<i64: 2>, scalar_prefetch = 0 : i64, scratch_operands = 0 : i64, tpu.core_type = #tpu.core_type<tc>, window_params = [{transform_indices = @transform_0, window_bounds = array<i64: 1, 16, 16>}, {pipeline_mode = #tpu.pipeline_mode<synchronous>, transform_indices = @transform_1, window_bounds = array<i64: 3, 16, 8>}, {pipeline_mode = #tpu.pipeline_mode<synchronous>, transform_indices = @transform_2, window_bounds = array<i64: 2, 8>}, {pipeline_mode = #tpu.pipeline_mode<synchronous>, transform_indices = @transform_3, window_bounds = array<i64: 9, 4, 8>}, {pipeline_mode = #tpu.pipeline_mode<synchronous>, transform_indices = @transform_4, window_bounds = array<i64: 2, 8>}, {pipeline_mode = #tpu.pipeline_mode<synchronous>, transform_indices = @transform_5, window_bounds = array<i64: 3, 4, 32>}, {pipeline_mode = #tpu.pipeline_mode<synchronous>, transform_indices = @transform_6, window_bounds = array<i64: 2, 32>}, {transform_indices = @transform_7, window_bounds = array<i64: 1, 16, 16>}]} {
    %c0 = arith.constant 0 : index
    %c0_0 = arith.constant 0 : index
    %c0_1 = arith.constant 0 : index
    %0 = vector.load %arg1[%c0, %c0_0, %c0_1] : memref<1x16x16xf32, #tpu.memory_space<vmem>>, vector<1x16x16xf32>
    %c0_2 = arith.constant 0 : index
    %c0_3 = arith.constant 0 : index
    %c0_4 = arith.constant 0 : index
    %1 = vector.load %arg2[%c0_2, %c0_3, %c0_4] : memref<3x16x8xbf16, #tpu.memory_space<vmem>>, vector<3x16x8xbf16>
    %c0_5 = arith.constant 0 : index
    %c0_6 = arith.constant 0 : index
    %2 = vector.load %arg3[%c0_5, %c0_6] : memref<2x8xf32, #tpu.memory_space<vmem>>, vector<2x8xf32>
    %cst = arith.constant 0.000000e+00 : f32
    %3 = vector.broadcast %cst : f32 to vector<1x1x16xf32>
    %4 = tpu.concatenate %3, %0, %3 in 1 : vector<1x1x16xf32>, vector<1x16x16xf32>, vector<1x1x16xf32> -> vector<1x18x16xf32>
    %cst_7 = arith.constant 0.000000e+00 : f32
    %5 = vector.broadcast %cst_7 : f32 to vector<16x8xf32>
    %6 = vector.extract_strided_slice %4 {offsets = [0, 0, 0], sizes = [1, 16, 16], strides = [1, 1, 1]} : vector<1x18x16xf32> to vector<1x16x16xf32>
    %7 = vector.shape_cast %6 : vector<1x16x16xf32> to vector<16x16xf32>
    %8 = arith.truncf %7 : vector<16x16xf32> to vector<16x16xbf16>
    %9 = vector.extract_strided_slice %1 {offsets = [0, 0, 0], sizes = [1, 16, 8], strides = [1, 1, 1]} : vector<3x16x8xbf16> to vector<1x16x8xbf16>
    %10 = vector.shape_cast %9 : vector<1x16x8xbf16> to vector<16x8xbf16>
    %cst_8 = arith.constant dense<0.000000e+00> : vector<16x8xf32>
    %11 = tpu.matmul %8, %10, %cst_8 {dimension_numbers = #tpu.dot_dimension_numbers<[1], [0], [0], [1], [0, 0, 1, 1], [], []>} : vector<16x16xbf16>, vector<16x8xbf16>, vector<16x8xf32> -> vector<16x8xf32>
    %12 = arith.addf %5, %11 : vector<16x8xf32>
    %13 = vector.extract_strided_slice %4 {offsets = [0, 1, 0], sizes = [1, 16, 16], strides = [1, 1, 1]} : vector<1x18x16xf32> to vector<1x16x16xf32>
    %14 = vector.shape_cast %13 : vector<1x16x16xf32> to vector<16x16xf32>
    %15 = arith.truncf %14 : vector<16x16xf32> to vector<16x16xbf16>
    %16 = vector.extract_strided_slice %1 {offsets = [1, 0, 0], sizes = [1, 16, 8], strides = [1, 1, 1]} : vector<3x16x8xbf16> to vector<1x16x8xbf16>
    %17 = vector.shape_cast %16 : vector<1x16x8xbf16> to vector<16x8xbf16>
    %cst_9 = arith.constant dense<0.000000e+00> : vector<16x8xf32>
    %18 = tpu.matmul %15, %17, %cst_9 {dimension_numbers = #tpu.dot_dimension_numbers<[1], [0], [0], [1], [0, 0, 1, 1], [], []>} : vector<16x16xbf16>, vector<16x8xbf16>, vector<16x8xf32> -> vector<16x8xf32>
    %19 = arith.addf %12, %18 : vector<16x8xf32>
    %20 = vector.extract_strided_slice %4 {offsets = [0, 2, 0], sizes = [1, 16, 16], strides = [1, 1, 1]} : vector<1x18x16xf32> to vector<1x16x16xf32>
    %21 = vector.shape_cast %20 : vector<1x16x16xf32> to vector<16x16xf32>
    %22 = arith.truncf %21 : vector<16x16xf32> to vector<16x16xbf16>
    %23 = vector.extract_strided_slice %1 {offsets = [2, 0, 0], sizes = [1, 16, 8], strides = [1, 1, 1]} : vector<3x16x8xbf16> to vector<1x16x8xbf16>
    %24 = vector.shape_cast %23 : vector<1x16x8xbf16> to vector<16x8xbf16>
    %cst_10 = arith.constant dense<0.000000e+00> : vector<16x8xf32>
    %25 = tpu.matmul %22, %24, %cst_10 {dimension_numbers = #tpu.dot_dimension_numbers<[1], [0], [0], [1], [0, 0, 1, 1], [], []>} : vector<16x16xbf16>, vector<16x8xbf16>, vector<16x8xf32> -> vector<16x8xf32>
    %26 = arith.addf %19, %25 : vector<16x8xf32>
    %27 = vector.extract_strided_slice %2 {offsets = [0, 0], sizes = [1, 8], strides = [1, 1]} : vector<2x8xf32> to vector<1x8xf32>
    %28 = vector.broadcast %27 : vector<1x8xf32> to vector<16x8xf32>
    %29 = arith.mulf %26, %28 : vector<16x8xf32>
    %30 = vector.extract_strided_slice %2 {offsets = [1, 0], sizes = [1, 8], strides = [1, 1]} : vector<2x8xf32> to vector<1x8xf32>
    %31 = vector.broadcast %30 : vector<1x8xf32> to vector<16x8xf32>
    %32 = arith.addf %29, %31 : vector<16x8xf32>
    %33 = vector.extract_strided_slice %32 {offsets = [0, 0], sizes = [16, 4], strides = [1, 1]} : vector<16x8xf32> to vector<16x4xf32>
    %cst_11 = arith.constant 0.000000e+00 : f32
    %34 = vector.broadcast %cst_11 : f32 to vector<16x4xf32>
    %35 = arith.subf %34, %33 : vector<16x4xf32>
    %36 = math.exp %35 : vector<16x4xf32>
    %cst_12 = arith.constant 1.000000e+00 : f32
    %37 = vector.broadcast %cst_12 : f32 to vector<16x4xf32>
    %38 = arith.addf %37, %36 : vector<16x4xf32>
    %39 = tpu.reciprocal %38 {approx = true} : vector<16x4xf32> -> vector<16x4xf32>
    %40 = vector.extract_strided_slice %32 {offsets = [0, 4], sizes = [16, 4], strides = [1, 1]} : vector<16x8xf32> to vector<16x4xf32>
    %41 = arith.mulf %39, %40 : vector<16x4xf32>
    %42 = vector.shape_cast %41 : vector<16x4xf32> to vector<1x16x4xf32>
    %c0_13 = arith.constant 0 : index
    %c0_14 = arith.constant 0 : index
    %c0_15 = arith.constant 0 : index
    %43 = vector.load %arg4[%c0_13, %c0_14, %c0_15] : memref<9x4x8xbf16, #tpu.memory_space<vmem>>, vector<9x4x8xbf16>
    %c0_16 = arith.constant 0 : index
    %c0_17 = arith.constant 0 : index
    %44 = vector.load %arg5[%c0_16, %c0_17] : memref<2x8xf32, #tpu.memory_space<vmem>>, vector<2x8xf32>
    %cst_18 = arith.constant 0.000000e+00 : f32
    %45 = vector.broadcast %cst_18 : f32 to vector<1x4x4xf32>
    %46 = tpu.concatenate %45, %42, %45 in 1 : vector<1x4x4xf32>, vector<1x16x4xf32>, vector<1x4x4xf32> -> vector<1x24x4xf32>
    %cst_19 = arith.constant 0.000000e+00 : f32
    %47 = vector.broadcast %cst_19 : f32 to vector<16x8xf32>
    %48 = vector.extract_strided_slice %46 {offsets = [0, 0, 0], sizes = [1, 16, 4], strides = [1, 1, 1]} : vector<1x24x4xf32> to vector<1x16x4xf32>
    %49 = vector.shape_cast %48 : vector<1x16x4xf32> to vector<16x4xf32>
    %50 = arith.truncf %49 : vector<16x4xf32> to vector<16x4xbf16>
    %51 = vector.extract_strided_slice %43 {offsets = [0, 0, 0], sizes = [1, 4, 8], strides = [1, 1, 1]} : vector<9x4x8xbf16> to vector<1x4x8xbf16>
    %52 = vector.shape_cast %51 : vector<1x4x8xbf16> to vector<4x8xbf16>
    %cst_20 = arith.constant dense<0.000000e+00> : vector<16x8xf32>
    %53 = tpu.matmul %50, %52, %cst_20 {dimension_numbers = #tpu.dot_dimension_numbers<[1], [0], [0], [1], [0, 0, 1, 1], [], []>} : vector<16x4xbf16>, vector<4x8xbf16>, vector<16x8xf32> -> vector<16x8xf32>
    %54 = arith.addf %47, %53 : vector<16x8xf32>
    %55 = vector.extract_strided_slice %46 {offsets = [0, 1, 0], sizes = [1, 16, 4], strides = [1, 1, 1]} : vector<1x24x4xf32> to vector<1x16x4xf32>
    %56 = vector.shape_cast %55 : vector<1x16x4xf32> to vector<16x4xf32>
    %57 = arith.truncf %56 : vector<16x4xf32> to vector<16x4xbf16>
    %58 = vector.extract_strided_slice %43 {offsets = [1, 0, 0], sizes = [1, 4, 8], strides = [1, 1, 1]} : vector<9x4x8xbf16> to vector<1x4x8xbf16>
    %59 = vector.shape_cast %58 : vector<1x4x8xbf16> to vector<4x8xbf16>
    %cst_21 = arith.constant dense<0.000000e+00> : vector<16x8xf32>
    %60 = tpu.matmul %57, %59, %cst_21 {dimension_numbers = #tpu.dot_dimension_numbers<[1], [0], [0], [1], [0, 0, 1, 1], [], []>} : vector<16x4xbf16>, vector<4x8xbf16>, vector<16x8xf32> -> vector<16x8xf32>
    %61 = arith.addf %54, %60 : vector<16x8xf32>
    %62 = vector.extract_strided_slice %46 {offsets = [0, 2, 0], sizes = [1, 16, 4], strides = [1, 1, 1]} : vector<1x24x4xf32> to vector<1x16x4xf32>
    %63 = vector.shape_cast %62 : vector<1x16x4xf32> to vector<16x4xf32>
    %64 = arith.truncf %63 : vector<16x4xf32> to vector<16x4xbf16>
    %65 = vector.extract_strided_slice %43 {offsets = [2, 0, 0], sizes = [1, 4, 8], strides = [1, 1, 1]} : vector<9x4x8xbf16> to vector<1x4x8xbf16>
    %66 = vector.shape_cast %65 : vector<1x4x8xbf16> to vector<4x8xbf16>
    %cst_22 = arith.constant dense<0.000000e+00> : vector<16x8xf32>
    %67 = tpu.matmul %64, %66, %cst_22 {dimension_numbers = #tpu.dot_dimension_numbers<[1], [0], [0], [1], [0, 0, 1, 1], [], []>} : vector<16x4xbf16>, vector<4x8xbf16>, vector<16x8xf32> -> vector<16x8xf32>
    %68 = arith.addf %61, %67 : vector<16x8xf32>
    %69 = vector.extract_strided_slice %46 {offsets = [0, 3, 0], sizes = [1, 16, 4], strides = [1, 1, 1]} : vector<1x24x4xf32> to vector<1x16x4xf32>
    %70 = vector.shape_cast %69 : vector<1x16x4xf32> to vector<16x4xf32>
    %71 = arith.truncf %70 : vector<16x4xf32> to vector<16x4xbf16>
    %72 = vector.extract_strided_slice %43 {offsets = [3, 0, 0], sizes = [1, 4, 8], strides = [1, 1, 1]} : vector<9x4x8xbf16> to vector<1x4x8xbf16>
    %73 = vector.shape_cast %72 : vector<1x4x8xbf16> to vector<4x8xbf16>
    %cst_23 = arith.constant dense<0.000000e+00> : vector<16x8xf32>
    %74 = tpu.matmul %71, %73, %cst_23 {dimension_numbers = #tpu.dot_dimension_numbers<[1], [0], [0], [1], [0, 0, 1, 1], [], []>} : vector<16x4xbf16>, vector<4x8xbf16>, vector<16x8xf32> -> vector<16x8xf32>
    %75 = arith.addf %68, %74 : vector<16x8xf32>
    %76 = vector.extract_strided_slice %46 {offsets = [0, 4, 0], sizes = [1, 16, 4], strides = [1, 1, 1]} : vector<1x24x4xf32> to vector<1x16x4xf32>
    %77 = vector.shape_cast %76 : vector<1x16x4xf32> to vector<16x4xf32>
    %78 = arith.truncf %77 : vector<16x4xf32> to vector<16x4xbf16>
    %79 = vector.extract_strided_slice %43 {offsets = [4, 0, 0], sizes = [1, 4, 8], strides = [1, 1, 1]} : vector<9x4x8xbf16> to vector<1x4x8xbf16>
    %80 = vector.shape_cast %79 : vector<1x4x8xbf16> to vector<4x8xbf16>
    %cst_24 = arith.constant dense<0.000000e+00> : vector<16x8xf32>
    %81 = tpu.matmul %78, %80, %cst_24 {dimension_numbers = #tpu.dot_dimension_numbers<[1], [0], [0], [1], [0, 0, 1, 1], [], []>} : vector<16x4xbf16>, vector<4x8xbf16>, vector<16x8xf32> -> vector<16x8xf32>
    %82 = arith.addf %75, %81 : vector<16x8xf32>
    %83 = vector.extract_strided_slice %46 {offsets = [0, 5, 0], sizes = [1, 16, 4], strides = [1, 1, 1]} : vector<1x24x4xf32> to vector<1x16x4xf32>
    %84 = vector.shape_cast %83 : vector<1x16x4xf32> to vector<16x4xf32>
    %85 = arith.truncf %84 : vector<16x4xf32> to vector<16x4xbf16>
    %86 = vector.extract_strided_slice %43 {offsets = [5, 0, 0], sizes = [1, 4, 8], strides = [1, 1, 1]} : vector<9x4x8xbf16> to vector<1x4x8xbf16>
    %87 = vector.shape_cast %86 : vector<1x4x8xbf16> to vector<4x8xbf16>
    %cst_25 = arith.constant dense<0.000000e+00> : vector<16x8xf32>
    %88 = tpu.matmul %85, %87, %cst_25 {dimension_numbers = #tpu.dot_dimension_numbers<[1], [0], [0], [1], [0, 0, 1, 1], [], []>} : vector<16x4xbf16>, vector<4x8xbf16>, vector<16x8xf32> -> vector<16x8xf32>
    %89 = arith.addf %82, %88 : vector<16x8xf32>
    %90 = vector.extract_strided_slice %46 {offsets = [0, 6, 0], sizes = [1, 16, 4], strides = [1, 1, 1]} : vector<1x24x4xf32> to vector<1x16x4xf32>
    %91 = vector.shape_cast %90 : vector<1x16x4xf32> to vector<16x4xf32>
    %92 = arith.truncf %91 : vector<16x4xf32> to vector<16x4xbf16>
    %93 = vector.extract_strided_slice %43 {offsets = [6, 0, 0], sizes = [1, 4, 8], strides = [1, 1, 1]} : vector<9x4x8xbf16> to vector<1x4x8xbf16>
    %94 = vector.shape_cast %93 : vector<1x4x8xbf16> to vector<4x8xbf16>
    %cst_26 = arith.constant dense<0.000000e+00> : vector<16x8xf32>
    %95 = tpu.matmul %92, %94, %cst_26 {dimension_numbers = #tpu.dot_dimension_numbers<[1], [0], [0], [1], [0, 0, 1, 1], [], []>} : vector<16x4xbf16>, vector<4x8xbf16>, vector<16x8xf32> -> vector<16x8xf32>
    %96 = arith.addf %89, %95 : vector<16x8xf32>
    %97 = vector.extract_strided_slice %46 {offsets = [0, 7, 0], sizes = [1, 16, 4], strides = [1, 1, 1]} : vector<1x24x4xf32> to vector<1x16x4xf32>
    %98 = vector.shape_cast %97 : vector<1x16x4xf32> to vector<16x4xf32>
    %99 = arith.truncf %98 : vector<16x4xf32> to vector<16x4xbf16>
    %100 = vector.extract_strided_slice %43 {offsets = [7, 0, 0], sizes = [1, 4, 8], strides = [1, 1, 1]} : vector<9x4x8xbf16> to vector<1x4x8xbf16>
    %101 = vector.shape_cast %100 : vector<1x4x8xbf16> to vector<4x8xbf16>
    %cst_27 = arith.constant dense<0.000000e+00> : vector<16x8xf32>
    %102 = tpu.matmul %99, %101, %cst_27 {dimension_numbers = #tpu.dot_dimension_numbers<[1], [0], [0], [1], [0, 0, 1, 1], [], []>} : vector<16x4xbf16>, vector<4x8xbf16>, vector<16x8xf32> -> vector<16x8xf32>
    %103 = arith.addf %96, %102 : vector<16x8xf32>
    %104 = vector.extract_strided_slice %46 {offsets = [0, 8, 0], sizes = [1, 16, 4], strides = [1, 1, 1]} : vector<1x24x4xf32> to vector<1x16x4xf32>
    %105 = vector.shape_cast %104 : vector<1x16x4xf32> to vector<16x4xf32>
    %106 = arith.truncf %105 : vector<16x4xf32> to vector<16x4xbf16>
    %107 = vector.extract_strided_slice %43 {offsets = [8, 0, 0], sizes = [1, 4, 8], strides = [1, 1, 1]} : vector<9x4x8xbf16> to vector<1x4x8xbf16>
    %108 = vector.shape_cast %107 : vector<1x4x8xbf16> to vector<4x8xbf16>
    %cst_28 = arith.constant dense<0.000000e+00> : vector<16x8xf32>
    %109 = tpu.matmul %106, %108, %cst_28 {dimension_numbers = #tpu.dot_dimension_numbers<[1], [0], [0], [1], [0, 0, 1, 1], [], []>} : vector<16x4xbf16>, vector<4x8xbf16>, vector<16x8xf32> -> vector<16x8xf32>
    %110 = arith.addf %103, %109 : vector<16x8xf32>
    %111 = vector.extract_strided_slice %44 {offsets = [0, 0], sizes = [1, 8], strides = [1, 1]} : vector<2x8xf32> to vector<1x8xf32>
    %112 = vector.broadcast %111 : vector<1x8xf32> to vector<16x8xf32>
    %113 = arith.mulf %110, %112 : vector<16x8xf32>
    %114 = vector.extract_strided_slice %44 {offsets = [1, 0], sizes = [1, 8], strides = [1, 1]} : vector<2x8xf32> to vector<1x8xf32>
    %115 = vector.broadcast %114 : vector<1x8xf32> to vector<16x8xf32>
    %116 = arith.addf %113, %115 : vector<16x8xf32>
    %117 = vector.extract_strided_slice %116 {offsets = [0, 0], sizes = [16, 4], strides = [1, 1]} : vector<16x8xf32> to vector<16x4xf32>
    %cst_29 = arith.constant 0.000000e+00 : f32
    %118 = vector.broadcast %cst_29 : f32 to vector<16x4xf32>
    %119 = arith.subf %118, %117 : vector<16x4xf32>
    %120 = math.exp %119 : vector<16x4xf32>
    %cst_30 = arith.constant 1.000000e+00 : f32
    %121 = vector.broadcast %cst_30 : f32 to vector<16x4xf32>
    %122 = arith.addf %121, %120 : vector<16x4xf32>
    %123 = tpu.reciprocal %122 {approx = true} : vector<16x4xf32> -> vector<16x4xf32>
    %124 = vector.extract_strided_slice %116 {offsets = [0, 4], sizes = [16, 4], strides = [1, 1]} : vector<16x8xf32> to vector<16x4xf32>
    %125 = arith.mulf %123, %124 : vector<16x4xf32>
    %126 = vector.shape_cast %125 : vector<16x4xf32> to vector<1x16x4xf32>
    %c0_31 = arith.constant 0 : index
    %c0_32 = arith.constant 0 : index
    %c0_33 = arith.constant 0 : index
    %127 = vector.load %arg6[%c0_31, %c0_32, %c0_33] : memref<3x4x32xbf16, #tpu.memory_space<vmem>>, vector<3x4x32xbf16>
    %c0_34 = arith.constant 0 : index
    %c0_35 = arith.constant 0 : index
    %128 = vector.load %arg7[%c0_34, %c0_35] : memref<2x32xf32, #tpu.memory_space<vmem>>, vector<2x32xf32>
    %cst_36 = arith.constant 0.000000e+00 : f32
    %129 = vector.broadcast %cst_36 : f32 to vector<1x1x4xf32>
    %130 = tpu.concatenate %129, %126, %129 in 1 : vector<1x1x4xf32>, vector<1x16x4xf32>, vector<1x1x4xf32> -> vector<1x18x4xf32>
    %cst_37 = arith.constant 0.000000e+00 : f32
    %131 = vector.broadcast %cst_37 : f32 to vector<16x32xf32>
    %132 = vector.extract_strided_slice %130 {offsets = [0, 0, 0], sizes = [1, 16, 4], strides = [1, 1, 1]} : vector<1x18x4xf32> to vector<1x16x4xf32>
    %133 = vector.shape_cast %132 : vector<1x16x4xf32> to vector<16x4xf32>
    %134 = arith.truncf %133 : vector<16x4xf32> to vector<16x4xbf16>
    %135 = vector.extract_strided_slice %127 {offsets = [0, 0, 0], sizes = [1, 4, 32], strides = [1, 1, 1]} : vector<3x4x32xbf16> to vector<1x4x32xbf16>
    %136 = vector.shape_cast %135 : vector<1x4x32xbf16> to vector<4x32xbf16>
    %cst_38 = arith.constant dense<0.000000e+00> : vector<16x32xf32>
    %137 = tpu.matmul %134, %136, %cst_38 {dimension_numbers = #tpu.dot_dimension_numbers<[1], [0], [0], [1], [0, 0, 1, 1], [], []>} : vector<16x4xbf16>, vector<4x32xbf16>, vector<16x32xf32> -> vector<16x32xf32>
    %138 = arith.addf %131, %137 : vector<16x32xf32>
    %139 = vector.extract_strided_slice %130 {offsets = [0, 1, 0], sizes = [1, 16, 4], strides = [1, 1, 1]} : vector<1x18x4xf32> to vector<1x16x4xf32>
    %140 = vector.shape_cast %139 : vector<1x16x4xf32> to vector<16x4xf32>
    %141 = arith.truncf %140 : vector<16x4xf32> to vector<16x4xbf16>
    %142 = vector.extract_strided_slice %127 {offsets = [1, 0, 0], sizes = [1, 4, 32], strides = [1, 1, 1]} : vector<3x4x32xbf16> to vector<1x4x32xbf16>
    %143 = vector.shape_cast %142 : vector<1x4x32xbf16> to vector<4x32xbf16>
    %cst_39 = arith.constant dense<0.000000e+00> : vector<16x32xf32>
    %144 = tpu.matmul %141, %143, %cst_39 {dimension_numbers = #tpu.dot_dimension_numbers<[1], [0], [0], [1], [0, 0, 1, 1], [], []>} : vector<16x4xbf16>, vector<4x32xbf16>, vector<16x32xf32> -> vector<16x32xf32>
    %145 = arith.addf %138, %144 : vector<16x32xf32>
    %146 = vector.extract_strided_slice %130 {offsets = [0, 2, 0], sizes = [1, 16, 4], strides = [1, 1, 1]} : vector<1x18x4xf32> to vector<1x16x4xf32>
    %147 = vector.shape_cast %146 : vector<1x16x4xf32> to vector<16x4xf32>
    %148 = arith.truncf %147 : vector<16x4xf32> to vector<16x4xbf16>
    %149 = vector.extract_strided_slice %127 {offsets = [2, 0, 0], sizes = [1, 4, 32], strides = [1, 1, 1]} : vector<3x4x32xbf16> to vector<1x4x32xbf16>
    %150 = vector.shape_cast %149 : vector<1x4x32xbf16> to vector<4x32xbf16>
    %cst_40 = arith.constant dense<0.000000e+00> : vector<16x32xf32>
    %151 = tpu.matmul %148, %150, %cst_40 {dimension_numbers = #tpu.dot_dimension_numbers<[1], [0], [0], [1], [0, 0, 1, 1], [], []>} : vector<16x4xbf16>, vector<4x32xbf16>, vector<16x32xf32> -> vector<16x32xf32>
    %152 = arith.addf %145, %151 : vector<16x32xf32>
    %153 = vector.extract_strided_slice %128 {offsets = [0, 0], sizes = [1, 32], strides = [1, 1]} : vector<2x32xf32> to vector<1x32xf32>
    %154 = vector.broadcast %153 : vector<1x32xf32> to vector<16x32xf32>
    %155 = arith.mulf %152, %154 : vector<16x32xf32>
    %156 = vector.extract_strided_slice %128 {offsets = [1, 0], sizes = [1, 32], strides = [1, 1]} : vector<2x32xf32> to vector<1x32xf32>
    %157 = vector.broadcast %156 : vector<1x32xf32> to vector<16x32xf32>
    %158 = arith.addf %155, %157 : vector<16x32xf32>
    %159 = vector.extract_strided_slice %158 {offsets = [0, 0], sizes = [16, 16], strides = [1, 1]} : vector<16x32xf32> to vector<16x16xf32>
    %cst_41 = arith.constant 0.000000e+00 : f32
    %160 = vector.broadcast %cst_41 : f32 to vector<16x16xf32>
    %161 = arith.subf %160, %159 : vector<16x16xf32>
    %162 = math.exp %161 : vector<16x16xf32>
    %cst_42 = arith.constant 1.000000e+00 : f32
    %163 = vector.broadcast %cst_42 : f32 to vector<16x16xf32>
    %164 = arith.addf %163, %162 : vector<16x16xf32>
    %165 = tpu.reciprocal %164 {approx = true} : vector<16x16xf32> -> vector<16x16xf32>
    %166 = vector.extract_strided_slice %158 {offsets = [0, 16], sizes = [16, 16], strides = [1, 1]} : vector<16x32xf32> to vector<16x16xf32>
    %167 = arith.mulf %165, %166 : vector<16x16xf32>
    %168 = vector.shape_cast %167 : vector<16x16xf32> to vector<1x16x16xf32>
    %169 = arith.addf %168, %0 : vector<1x16x16xf32>
    %c0_43 = arith.constant 0 : index
    %c0_44 = arith.constant 0 : index
    %c0_45 = arith.constant 0 : index
    %170 = vector.load %arg8[%c0_43, %c0_44, %c0_45] : memref<1x16x16xf32, #tpu.memory_space<vmem>>, vector<1x16x16xf32>
    tpu.vector_store %arg8[%c0_43, %c0_44, %c0_45], %169 {strides = array<i32>} : memref<1x16x16xf32, #tpu.memory_space<vmem>>, vector<1x16x16xf32>,
    return
  }
  func.func @transform_0(%arg0: i32) -> (i32, i32, i32) {
    %c0_i32 = arith.constant 0 : i32
    %c0_i32_0 = arith.constant 0 : i32
    %c0_i32_1 = arith.constant 0 : i32
    return %arg0, %c0_i32, %c0_i32_0 : i32, i32, i32
  }
  func.func @transform_1(%arg0: i32) -> (i32, i32, i32) {
    %c0_i32 = arith.constant 0 : i32
    %c0_i32_0 = arith.constant 0 : i32
    %c0_i32_1 = arith.constant 0 : i32
    %c0_i32_2 = arith.constant 0 : i32
    return %c0_i32, %c0_i32_0, %c0_i32_1 : i32, i32, i32
  }
  func.func @transform_2(%arg0: i32) -> (i32, i32) {
    %c0_i32 = arith.constant 0 : i32
    %c0_i32_0 = arith.constant 0 : i32
    %c0_i32_1 = arith.constant 0 : i32
    return %c0_i32, %c0_i32_0 : i32, i32
  }
  func.func @transform_3(%arg0: i32) -> (i32, i32, i32) {
    %c0_i32 = arith.constant 0 : i32
    %c0_i32_0 = arith.constant 0 : i32
    %c0_i32_1 = arith.constant 0 : i32
    %c0_i32_2 = arith.constant 0 : i32
    return %c0_i32, %c0_i32_0, %c0_i32_1 : i32, i32, i32
  }
  func.func @transform_4(%arg0: i32) -> (i32, i32) {
    %c0_i32 = arith.constant 0 : i32
    %c0_i32_0 = arith.constant 0 : i32
    %c0_i32_1 = arith.constant 0 : i32
    return %c0_i32, %c0_i32_0 : i32, i32
  }
  func.func @transform_5(%arg0: i32) -> (i32, i32, i32) {
    %c0_i32 = arith.constant 0 : i32
    %c0_i32_0 = arith.constant 0 : i32
    %c0_i32_1 = arith.constant 0 : i32
    %c0_i32_2 = arith.constant 0 : i32
    return %c0_i32, %c0_i32_0, %c0_i32_1 : i32, i32, i32
  }
  func.func @transform_6(%arg0: i32) -> (i32, i32) {
    %c0_i32 = arith.constant 0 : i32
    %c0_i32_0 = arith.constant 0 : i32
    %c0_i32_1 = arith.constant 0 : i32
    return %c0_i32, %c0_i32_0 : i32, i32
  }
  func.func @transform_7(%arg0: i32) -> (i32, i32, i32) {
    %c0_i32 = arith.constant 0 : i32
    %c0_i32_0 = arith.constant 0 : i32
    %c0_i32_1 = arith.constant 0 : i32
    return %arg0, %c0_i32, %c0_i32_0 : i32, i32, i32
  }
}

</mosaic_0001>

<bundles_post_ra>
// kernel: tpu_custom_call.1
= control target key start
LH: loop header
LB: loop body
LE: loop exit
PB: predicated region body
PF: predicated region fallthrough
CT: control target
= control target key end

     0   :  { %12 = vsyncpa [#allocation3], 0  ;;  %s1997_s0 = inlined_call_operand.vmem [shape: f32[2,16,16], index: 0, kind: input, shape index: {}]   ;;  %s1998_s1 = inlined_call_operand.vmem [shape: bf16[3,16,8], index: 1, kind: input, shape index: {}]   ;;  %s1999_s2 = inlined_call_operand.vmem [shape: f32[2,8], index: 2, kind: input, shape index: {}]   ;;  %s2000_s3 = inlined_call_operand.vmem [shape: bf16[9,4,8], index: 3, kind: input, shape index: {}]   ;;  %s2001_s4 = inlined_call_operand.vmem [shape: f32[2,8], index: 4, kind: input, shape index: {}]   ;;  %s2002_s5 = inlined_call_operand.vmem [shape: bf16[3,4,32], index: 5, kind: input, shape index: {}]   ;;  %s2003_s6 = inlined_call_operand.vmem [shape: f32[2,32], index: 6, kind: input, shape index: {}]   ;;  %s2004_s7 = inlined_call_operand.hbm [shape: f32[2,16,16], index: 7, kind: output, shape index: {}]  }
   0x1   :  { %14 = vsyncpa [#allocation3 + $0x1], 0  ;;  %s1716_s24 = smov 0   ;;  %s1718_s25 = smov 0  }
   0x2   :  { %s1720_s26 = smov 0   ;;  %s1722_s27 = smov 0  }
   0x3 LB: > { %s1737_s28 = sadd.s32 4294967295, %s1667_s27   ;;  %s1335_s29 = sadd.s32 4294967294, %s1667_s27   ;;  %s1667_s27 = sphi %s1722_s27, %s2010_s27   ;;  %s1663_s26 = sphi %s1720_s26, %s2009_s26   ;;  %s1659_s25 = sphi %s1718_s25, %s2008_s25   ;;  %s1655_s24 = sphi %s1716_s24, %s2007_s24  }
   0x4   : > { %s1741_s30 = sadd.s32 1, %s1667_s27   ;;  %s179_s8 = sadd.s32 1, %s1663_s26 }
   0x5   : > { %s176_s9 = ssub.s32 %s1667_s27, %s1741_s30  ;;  %p189_p0 = scmp.ne.s32.totalorder %s1663_s26, %s1659_s25 }
   0x6   : > { %p177_p1 = scmp.eq.s32.totalorder %s176_s9, 0  ;;  %p190_p2 = scmp.eq.s32.totalorder %s1737_s28, 1 }
   0x7   : > { %p195_p3 = scmp.ne.s32.totalorder %s1659_s25, %s1655_s24  ;;  %p196_p4 = scmp.eq.s32.totalorder %s1335_s29, 1 }
   0x8   : > { %s1752_s10 = scalar_select %p177_p1, %s1663_s26, %s179_s8  }
   0x9   : > { %p1754_p5 = por %p190_p2, %p189_p0  ;;  %p1758_p6 = por %p196_p4, %p195_p3 }
   0xa   : > { %p1338_p7 = scmp.ge.s32.totalorder %s1667_s27, 1  ;;  %p240_p8 = scmp.lt.s32.totalorder %s1667_s27, 3 }
   0xc   : > { %p241_p9 = pnand %p1338_p7, %p240_p8 }
   0xd   : > { %v1578_v0 = vld [vmem:[%s1998_s1 + $0x8] sm:$0xff] (!%p241_p9)   ;;  %v1669_v1 = vmov (!%p241_p9), 0.0   ;;  %p272_p10 = scmp.lt.s32.totalorder (!%p241_p9), %s1737_s28, 1  ;;  %vm1670_vm0 = vmmov (!%p241_p9), 0   ;;  %vm289_vm1 = vcmask (!%p241_p9), 1040384   ;;  %vm319_vm3 = vcmask (!%p241_p9), 130048  }
   0xe   : > { %244 = sbr.rel (%p241_p9) target bundleno = 1215 (0x4bf), region = 48  ;;  %1397 = vmatprep.subr.bf16.mxu0 (!%p241_p9), %v1669_v1  ;;  %1421 = vmatprep.subr.bf16.mxu1 (!%p241_p9), %v1669_v1  ;;  %vm300_vm2 = vsmask.f32 (!%p241_p9), 7424  ;;  %v1579_v17 = vld [vmem:[%s1998_s1] sm:$0xff] (!%p241_p9)   ;;  %v1580_v19 = vld [vmem:[%s1998_s1 + $0x10] sm:$0xff] (!%p241_p9)   ;;  %vm415_vm4 = vcmask (!%p241_p9), 1046528   ;;  %v471_v23 = vlaneseq (!%p241_p9) }
   0xf   : > { %1398 = vmatpush3.bf16.msra.mxu0 (!%p241_p9), %v1578_v0  ;;  %1399 = vmatprep.mubr.msk.bf16.mxu0 (!%p241_p9), %vm1670_vm0, %v1669_v1  ;;  %v286_v26 = vld [vmem:[%s1999_s2] sm:$0x3] (!%p241_p9)  ;;  %vm542_vm5 = vcmask (!%p241_p9), 1041408   ;;  %v504_v39 = vld [vmem:[%s2000_s3 + $0x2] sm:$0x3] (!%p241_p9)  ;;  %vm515_vm6 = vcmask (!%p241_p9), 1043456  }
  0x10   : > { %1403 = vmatprep.subr.bf16.mxu0 (!%p241_p9), %v1669_v1  ;;  %1423 = vmatprep.mubr.msk.bf16.mxu1 (!%p241_p9), %vm1670_vm0, %v1669_v1  ;;  %v472_v24 = vshrl.u32 (!%p241_p9), %v471_v23, 7  ;;  %v503_v29 = vld [vmem:[%s2000_s3] sm:$0x3] (!%p241_p9)  ;;  %v544_v40 = vsel (!%p241_p9), %vm542_vm5, %v504_v39, 0  ;;  %v505_v58 = vld [vmem:[%s2000_s3 + $0x4] sm:$0x3] (!%p241_p9) }
  0x11   : > { %v590_v31 = vsel (!%p241_p9), %vm542_vm5, %v503_v29, 0  ;;  %vm538_vm7 = vcmask (!%p241_p9), 31744   ;;  %vm687_vm8 = vsmask.f32 (!%p241_p9), 6400  ;;  %vm746_vm9 = vcmask (!%p241_p9), 1045504   ;;  %s1672_s13 = smov (!%p241_p9), 112  }
  0x12   : > { %v1807_v25 = vsub.s32 (!%p241_p9), 0, %v472_v24  ;;  %v1812_v27 = vsub.s32 (!%p241_p9), 1, %v472_v24  ;;  %1422 = vmatpush3.bf16.msra.mxu1 (!%p241_p9), %v590_v31  ;;  %vm799_vm10 = vsmask.f32 (!%p241_p9), 5376  ;;  %vm856_vm11 = vcmask (!%p241_p9), 1044480   ;;  %s269_s14 = sand.u32 (!%p241_p9), 1, %s1659_s25  }
  0x13   : > { %1427 = vmatprep.subr.bf16.mxu1 (!%p241_p9), %v1669_v1  ;;  %vm909_vm12 = vsmask.f32 (!%p241_p9), 4352  ;;  %s1673_s23 = smov (!%p241_p9), [#allocation2]  }
  0x14   : > { %v474_v28 = vrot.slane (!%p241_p9), %v286_v26, %v1807_v25  ;;  %v480_v30 = vrot.slane (!%p241_p9), %v286_v26, %v1812_v27  ;;  %s1609_s29 = sshll.u32 (!%p241_p9), %s1673_s23, 4  ;;  %s1610_s29 = int_to_ptr.vmem [resolvable:$false] %s1609_s29 }
  0x15   : > { %s273_s15 = scalar_select %p272_p10, %s1737_s28, 1 }
  0x16   : > { %s1611_s8 = scalar_lea.vmem %s1610_s29, 512 }
  0x17   : > { %s1365_s16 = sshll.u32 %s273_s15, 4  ;;  %s1339_s15 = sshll.u32 %s269_s14, 4 }
  0x18   : > { %s276_s19 = scalar_lea.vmem %s1997_s0, %s1365_s16  ;;  %s1671_s16 = smov 124  }
  0x19   : > { %v1779_v2 = vld [vmem:[%s276_s19] sm:$0xff]  ;;  %v1781_v3 = vld [vmem:[%s276_s19 + $0x8] sm:$0xff]  ;;  %s271_s17 = scalar_lea.vmem [#allocation2], %s1339_s15  ;;  %s1366_s19 = sshll.u32 %s1737_s28, 8 }
  0x1a   : > { %v290_v4 = vrot.slane %v1779_v2, 7  ;;  %v291_v5 = vrot.slane %v1781_v3, 7  ;;  %s1273_s18 = sshll.u32 %s271_s17, 4  ;;  %s1956_s28 = scalar_lea.sflag [#allocation3], %s269_s14  ;;  %s1951_s18 = int_to_ptr.vmem [resolvable:$true] %s1273_s18 }
  0x1b   : > { %s1605_s22 = scalar_lea.vmem %s1951_s18, 256  ;;  %p1612_p0 = scmp.lt.s32.totalorder %s1951_s18, %s1610_s29 }
  0x1c   : > { %v292_v6 = vsel %vm289_vm1, %v290_v4, %v291_v5  ;;  %v296_v7 = vsel %vm289_vm1, 0.0, %v290_v4  ;;  %v297_v8 = vsel %vm289_vm1, %v291_v5, 0.0  ;;  %v642_v4 = vsel %vm542_vm5, %v505_v58, 0  ;;  %p1606_p11 = scmp.ne.s32.totalorder %s1951_s18, %s1605_s22  ;;  %p1613_p1 = scmp.lt.s32.totalorder %s1611_s8, %s1605_s22 }
  0x1d   : > { %v298_v9 = vpack.c.bf16 %v292_v6, %v296_v7  ;;  %v299_v10 = vpack.c.bf16 %v297_v8, %v297_v8 }
  0x1e   : > { %p1607_p12 = pnand %p1606_p11, %p1754_p5  ;;  %p1614_p2 = por %p1613_p1, %p1612_p0 }
  0x1f   : > { %v302_v11 = vshrl.u32 %v298_v9, 16  ;;  %v304_v12 = vshll.u32 %v298_v9, 16  ;;  %v309_v13 = vshll.u32 %v299_v10, 16  ;;  %v416_v20 = vrot.slane %v298_v9, 1 }
  0x20   : > { %v417_v21 = vrot.slane %v299_v10, 1  ;;  %p1608_p13 = pneg %p1607_p12 }
  0x21   : > { %v306_v14 = vrot.slane %v304_v12, 1  ;;  %v311_v15 = vrot.slane %v309_v13, 1 }
  0x22   : > { %v418_v22 = vsel %vm415_vm4, %v416_v20, %v417_v21  ;;  %p1615_p3 = pnand %p1614_p2, %p1608_p13 }
  0x23   : > { %v307_v16 = vor.u32 %v306_v14, %v302_v11 }
  0x25   : > { %v312_v18 = vsel %vm300_vm2, %v307_v16, %v311_v15 }
  0x26   : > { %1400 = vmatmul.mubr.msk.bf16.vlgmr.msra.gmra.mrb[0].mxu0 %vm319_vm3, %v312_v18 }
  0x27   : > { %1404 = vmatpush3.bf16.msra.mxu0 %v1579_v17  ;;  %1405 = vmatprep.mubr.msk.bf16.mxu0 %vm1670_vm0, %v1669_v1 }
  0x28   : > { %1409 = vmatprep.subr.bf16.mxu0 %v1669_v1 }
  0x32   : > { %1406 = vmatmul.mubr.msk.bf16.vlgmr.msra.gmra.mrb[0].mxu0 %vm319_vm3, %v298_v9 }
  0x33   : > { %1410 = vmatpush3.bf16.msra.mxu0 %v1580_v19  ;;  %1411 = vmatprep.mubr.msk.bf16.mxu0 %vm1670_vm0, %v1669_v1 }
  0x34   : > { %1415 = vmatprep.subr.bf16.mxu0 %v1669_v1 }
  0x3e   : > { %1412 = vmatmul.mubr.msk.bf16.vlgmr.msra.gmra.mrb[0].mxu0 %vm319_vm3, %v418_v22 }
  0x3f   : > { %1417 = vmatprep.mubr.msk.bf16.mxu0 %vm1670_vm0, %v1669_v1  ;;  %1416 = vmatpush3.bf16.msra.mxu0 %v544_v40 }
  0x40   : > { %1469 = vmatprep.subr.bf16.mxu0 %v1669_v1 }
 0x111   : > { %v462_v32 = vpop.f32.mrb[0].mxu0 }
 0x112   : > { %v475_v33 = vmul.f32 %v474_v28, %v462_v32  ;;  %v1413_v34 = vpop.f32.mrb[1].mxu0 }
 0x113   : > { %v465_v35 = vpop.f32.mrb[2].mxu0 }
 0x114   : > { %v476_v36 = vmul.f32 %v474_v28, %v465_v35  ;;  %v1414_v37 = vpop.f32.mrb[3].mxu0  ;;  %v481_v38 = vadd.f32 %v480_v30, %v475_v33  ;;  %v506_v35 = vld [vmem:[%s2000_s3 + $0x6] sm:$0x3] }
 0x116   : > { %495 = vrot.lane.b32.xlu0 %v481_v38, %s1671_s16  ;;  %v482_v41 = vadd.f32 %v480_v30, %v476_v36  ;;  %v483_v42 = vsub.f32 0.0, %v481_v38 }
 0x118   : > { %v484_v43 = vsub.f32 0.0, %v482_v41  ;;  %v485_v44 = vmul.f32 1.442695, %v483_v42 }
 0x11a   : > { %497 = vrot.lane.b32.xlu0 %v482_v41, %s1671_s16  ;;  %v487_v45 = vmul.f32 1.442695, %v484_v43  ;;  %1581 = vpow2.f32 %v485_v44  ;;  %v701_v44 = vsel %vm542_vm5, %v506_v35, 0 }
 0x11c   : > { %1583 = vpow2.f32 %v487_v45 }
 0x124   : > { %v1582_v46 = vpop.eup %1581 }
 0x125   : > { %v489_v47 = vadd.f32 1.0, %v1582_v46 }
 0x126   : > { %v1584_v48 = vpop.eup %1583 }
 0x127   : > { %v490_v49 = vadd.f32 1.0, %v1584_v48  ;;  %1585 = vrcp.f32 %v489_v47  ;;  %v507_v47 = vld [vmem:[%s2000_s3 + $0x8] sm:$0x3] }
 0x128   : > { %v754_v48 = vsel %vm542_vm5, %v507_v47, 0 }
 0x129   : > { %1587 = vrcp.f32 %v490_v49  ;;  %v508_v49 = vld [vmem:[%s2000_s3 + $0xa] sm:$0x3] }
 0x131   : > { %v1586_v50 = vpop.eup %1585 }
 0x133   : > { %v1588_v53 = vpop.eup %1587 }
 0x188   : > { %v496_v51 = vpop.permute.xlu0 %495 }
 0x189   : > { %v501_v52 = vmul.f32 %v1586_v50, %v496_v51  ;;  %v811_v50 = vsel %vm542_vm5, %v508_v49, 0  ;;  %v509_v51 = vld [vmem:[%s2000_s3 + $0xc] sm:$0x3] }
 0x18b   : > { %v516_v55 = vrot.slane %v501_v52, 4  ;;  %v864_v52 = vsel %vm542_vm5, %v509_v51, 0 }
 0x18c   : > { %v498_v54 = vpop.permute.xlu0 %497 }
 0x18d   : > { %v502_v56 = vmul.f32 %v1588_v53, %v498_v54  ;;  %v522_v59 = vsel %vm515_vm6, 0.0, %v516_v55  ;;  %v510_v53 = vld [vmem:[%s2000_s3 + $0xe] sm:$0x3] }
 0x18e   : > { %v921_v54 = vsel %vm542_vm5, %v510_v53, 0 }
 0x18f   : > { %v517_v57 = vrot.slane %v502_v56, 4 }
 0x191   : > { %v1831_v60 = vsel %vm515_vm6, %v516_v55, %v517_v57  ;;  %v1833_v61 = vsel %vm515_vm6, %v517_v57, 0.0  ;;  %v511_v55 = vld [vmem:[%s2000_s3 + $0x10] sm:$0x3] }
 0x192   : > { %v524_v62 = vpack.c.bf16 %v1831_v60, %v522_v59  ;;  %v525_v63 = vpack.c.bf16 %v1833_v61, %v1833_v61  ;;  %v966_v0 = vpack.c.bf16 %v1833_v61, %v1831_v60  ;;  %v971_v56 = vsel %vm542_vm5, %v511_v55, 0 }
 0x194   : > { %v534_v5 = vshll.u32 %v525_v63, 16  ;;  %v691_v6 = vshrl.u32 %v525_v63, 16  ;;  %1424 = vmatmul.mubr.msk.bf16.vlgmr.msra.gmra.mrb[0].mxu1 %vm538_vm7, %v524_v62  ;;  %v527_v7 = vshrl.u32 %v524_v62, 16  ;;  %v529_v8 = vshll.u32 %v524_v62, 16 }
 0x195   : > { %1428 = vmatpush3.bf16.msra.mxu1 %v642_v4  ;;  %1429 = vmatprep.mubr.msk.bf16.mxu1 %vm1670_vm0, %v1669_v1  ;;  %v635_v9 = vrot.slane %v524_v62, 1  ;;  %v636_v10 = vrot.slane %v525_v63, 1  ;;  %v747_v11 = vrot.slane %v524_v62, 2  ;;  %v748_v12 = vrot.slane %v525_v63, 2 }
 0x196   : > { %v531_v13 = vrot.slane %v529_v8, 1  ;;  %v536_v14 = vrot.slane %v534_v5, 1  ;;  %1433 = vmatprep.subr.bf16.mxu1 %v1669_v1  ;;  %v688_v15 = vrot.slane %v527_v7, 1  ;;  %v689_v16 = vrot.slane %v529_v8, 2 }
 0x197   : > { %v637_v17 = vsel %vm415_vm4, %v635_v9, %v636_v10  ;;  %v693_v18 = vrot.slane %v691_v6, 1  ;;  %v694_v19 = vrot.slane %v534_v5, 2  ;;  %v749_v20 = vsel %vm746_vm9, %v747_v11, %v748_v12  ;;  %v1049_v12 = vld [vmem:[%s2002_s5 + $0x2] sm:$0x3] }
 0x198   : > { %v532_v21 = vor.u32 %v531_v13, %v527_v7  ;;  %v690_v22 = vor.u32 %v689_v16, %v688_v15  ;;  %v800_v23 = vrot.slane %v527_v7, 2  ;;  %v801_v24 = vrot.slane %v529_v8, 3 }
 0x199   : > { %v695_v26 = vor.u32 %v694_v19, %v693_v18  ;;  %v803_v28 = vrot.slane %v691_v6, 2  ;;  %v804_v29 = vrot.slane %v534_v5, 3  ;;  %v857_v30 = vrot.slane %v524_v62, 3 }
 0x19a   : > { %v537_v31 = vsel %vm300_vm2, %v532_v21, %v536_v14  ;;  %v802_v32 = vor.u32 %v801_v24, %v800_v23  ;;  %v858_v33 = vrot.slane %v525_v63, 3  ;;  %v910_v34 = vrot.slane %v527_v7, 3  ;;  %v512_v63 = vld [vmem:[%s2001_s4] sm:$0x3] }
 0x19b   : > { %1418 = vmatmul.mubr.msk.bf16.vlgmr.msra.gmra.mrb[4].mxu0 %vm538_vm7, %v537_v31  ;;  %v696_v36 = vsel %vm687_vm8, %v690_v22, %v695_v26  ;;  %v805_v37 = vor.u32 %v804_v29, %v803_v28  ;;  %v911_v38 = vrot.slane %v529_v8, 4  ;;  %v913_v39 = vrot.slane %v691_v6, 3 }
 0x19c   : > { %v859_v40 = vsel %vm856_vm11, %v857_v30, %v858_v33  ;;  %v914_v41 = vrot.slane %v534_v5, 4  ;;  %1471 = vmatprep.mubr.msk.bf16.mxu0 %vm1670_vm0, %v1669_v1  ;;  %v1019_v4 = vrot.slane %v512_v63, %v1807_v25  ;;  %v1025_v8 = vrot.slane %v512_v63, %v1812_v27 }
 0x19d   : > { %v806_v42 = vsel %vm799_vm10, %v802_v32, %v805_v37  ;;  %v912_v43 = vor.u32 %v911_v38, %v910_v34  ;;  %v1080_v13 = vsel %vm542_vm5, %v1049_v12, 0 }
 0x19e   : > { %v915_v45 = vor.u32 %v914_v41, %v913_v39  ;;  %1470 = vmatpush3.bf16.msra.mxu0 %v1080_v13 }
 0x19f   : > { %1475 = vmatprep.subr.bf16.mxu0 %v1669_v1 }
 0x1a0   : > { %1430 = vmatmul.mubr.msk.bf16.vlgmr.msra.gmra.mrb[0].mxu1 %vm538_vm7, %v637_v17  ;;  %v916_v46 = vsel %vm909_vm12, %v912_v43, %v915_v45 }
 0x1a1   : > { %1434 = vmatpush3.bf16.msra.mxu1 %v701_v44  ;;  %1435 = vmatprep.mubr.msk.bf16.mxu1 %vm1670_vm0, %v1669_v1  ;;  %v1048_v44 = vld [vmem:[%s2002_s5] sm:$0x3] }
 0x1a2   : > { %1439 = vmatprep.subr.bf16.mxu1 %v1669_v1 }
 0x1ac   : > { %1436 = vmatmul.mubr.msk.bf16.vlgmr.msra.gmra.mrb[0].mxu1 %vm538_vm7, %v696_v36 }
 0x1ad   : > { %1440 = vmatpush3.bf16.msra.mxu1 %v754_v48  ;;  %1441 = vmatprep.mubr.msk.bf16.mxu1 %vm1670_vm0, %v1669_v1  ;;  %v1126_v48 = vsel %vm542_vm5, %v1048_v44, 0 }
 0x1ae   : > { %1445 = vmatprep.subr.bf16.mxu1 %v1669_v1 }
 0x1b8   : > { %1442 = vmatmul.mubr.msk.bf16.vlgmr.msra.gmra.mrb[0].mxu1 %vm538_vm7, %v749_v20 }
 0x1b9   : > { %1446 = vmatpush3.bf16.msra.mxu1 %v811_v50  ;;  %1447 = vmatprep.mubr.msk.bf16.mxu1 %vm1670_vm0, %v1669_v1  ;;  %v1050_v50 = vld [vmem:[%s2002_s5 + $0x4] sm:$0x3] }
 0x1ba   : > { %1451 = vmatprep.subr.bf16.mxu1 %v1669_v1  ;;  %v1178_v51 = vsel %vm542_vm5, %v1050_v50, 0 }
 0x1c4   : > { %1448 = vmatmul.mubr.msk.bf16.vlgmr.msra.gmra.mrb[0].mxu1 %vm538_vm7, %v806_v42 }
 0x1c5   : > { %1452 = vmatpush3.bf16.msra.mxu1 %v864_v52  ;;  %1453 = vmatprep.mubr.msk.bf16.mxu1 %vm1670_vm0, %v1669_v1  ;;  %v1051_v52 = vld [vmem:[%s2003_s6] sm:$0x3] }
 0x1c6   : > { %1457 = vmatprep.subr.bf16.mxu1 %v1669_v1  ;;  %v1226_v53 = vrot.slane %v1051_v52, %v1807_v25 }
 0x1d0   : > { %1454 = vmatmul.mubr.msk.bf16.vlgmr.msra.gmra.mrb[0].mxu1 %vm538_vm7, %v859_v40 }
 0x1d1   : > { %1458 = vmatpush3.bf16.msra.mxu1 %v921_v54  ;;  %1459 = vmatprep.mubr.msk.bf16.mxu1 %vm1670_vm0, %v1669_v1  ;;  %v1232_v54 = vrot.slane %v1051_v52, %v1812_v27 }
 0x1d2   : > { %1463 = vmatprep.subr.bf16.mxu1 %v1669_v1 }
 0x1dc   : > { %1460 = vmatmul.mubr.msk.bf16.vlgmr.msra.gmra.mrb[0].mxu1 %vm538_vm7, %v916_v46 }
 0x1dd   : > { %1464 = vmatpush3.bf16.msra.mxu1 %v971_v56  ;;  %1465 = vmatprep.mubr.msk.bf16.mxu1 %vm1670_vm0, %v1669_v1 }
 0x1e8   : > { %1466 = vmatmul.mubr.msk.bf16.vlgmr.msra.gmra.mrb[0].mxu1 %vm538_vm7, %v966_v0 }
 0x26e   : > { %v580_v57 = vpop.f32.mrb[4].mxu0 }
 0x26f   : > { %v1419_v58 = vpop.f32.mrb[5].mxu0 }
 0x270   : > { %v583_v59 = vpop.f32.mrb[6].mxu0 }
 0x271   : > { %v1420_v62 = vpop.f32.mrb[7].mxu0 }
 0x2bb   : > { %v1007_v5 = vpop.f32.mrb[0].mxu1 }
 0x2bc   : > { %v1487_v6 = vadd.f32 %v1007_v5, %v580_v57  ;;  %v1467_v7 = vpop.f32.mrb[1].mxu1 }
 0x2bd   : > { %v1010_v9 = vpop.f32.mrb[2].mxu1 }
 0x2be   : > { %v1020_v10 = vmul.f32 %v1487_v6, %v1019_v4  ;;  %v1488_v60 = vadd.f32 %v1010_v9, %v583_v59  ;;  %v1468_v61 = vpop.f32.mrb[3].mxu1 }
 0x2c0   : > { %v1021_v0 = vmul.f32 %v1488_v60, %v1019_v4  ;;  %v1026_v11 = vadd.f32 %v1025_v8, %v1020_v10 }
 0x2c2   : > { %1040 = vrot.lane.b32.xlu1 %v1026_v11, %s1671_s16  ;;  %v1027_v14 = vadd.f32 %v1025_v8, %v1021_v0  ;;  %v1028_v15 = vsub.f32 0.0, %v1026_v11 }
 0x2c4   : > { %v1030_v16 = vmul.f32 1.442695, %v1028_v15  ;;  %v1029_v17 = vsub.f32 0.0, %v1027_v14 }
 0x2c6   : > { %1042 = vrot.lane.b32.xlu1 %v1027_v14, %s1671_s16  ;;  %1589 = vpow2.f32 %v1030_v16  ;;  %v1032_v18 = vmul.f32 1.442695, %v1029_v17  ;;  %s1949_s16 = scalar_lea.hbm %s2004_s7, %s1366_s19 }
 0x2c8   : > { %1591 = vpow2.f32 %v1032_v18 }
 0x2d0   : > { %v1590_v19 = vpop.eup %1589 }
 0x2d1   : > { %v1034_v20 = vadd.f32 1.0, %v1590_v19 }
 0x2d2   : > { %v1592_v21 = vpop.eup %1591 }
 0x2d3   : > { %1593 = vrcp.f32 %v1034_v20  ;;  %v1035_v22 = vadd.f32 1.0, %v1592_v21 }
 0x2d5   : > { %1595 = vrcp.f32 %v1035_v22 }
 0x2dd   : > { %v1594_v23 = vpop.eup %1593 }
 0x2df   : > { %v1596_v28 = vpop.eup %1595 }
 0x334   : > { %v1041_v24 = vpop.permute.xlu1 %1040 }
 0x335   : > { %v1046_v26 = vmul.f32 %v1594_v23, %v1041_v24 }
 0x337   : > { %v1054_v30 = vrot.slane %v1046_v26, 7 }
 0x338   : > { %v1043_v29 = vpop.permute.xlu1 %1042 }
 0x339   : > { %v1047_v31 = vmul.f32 %v1596_v28, %v1043_v29  ;;  %v1060_v33 = vsel %vm289_vm1, 0.0, %v1054_v30 }
 0x33b   : > { %v1055_v32 = vrot.slane %v1047_v31, 7 }
 0x33d   : > { %v1056_v34 = vsel %vm289_vm1, %v1054_v30, %v1055_v32  ;;  %v1061_v35 = vsel %vm289_vm1, %v1055_v32, 0.0 }
 0x33e   : > { %v1062_v36 = vpack.c.bf16 %v1056_v34, %v1060_v33  ;;  %v1063_v37 = vpack.c.bf16 %v1061_v35, %v1061_v35 }
 0x340   : > { %v1072_v38 = vshll.u32 %v1063_v37, 16  ;;  %v1172_v39 = vrot.slane %v1063_v37, 1  ;;  %v1067_v40 = vshll.u32 %v1062_v36, 16  ;;  %v1171_v41 = vrot.slane %v1062_v36, 1 }
 0x341   : > { %v1065_v42 = vshrl.u32 %v1062_v36, 16 }
 0x342   : > { %v1069_v43 = vrot.slane %v1067_v40, 1  ;;  %v1173_v45 = vsel %vm415_vm4, %v1171_v41, %v1172_v39  ;;  %v1074_v46 = vrot.slane %v1072_v38, 1 }
 0x344   : > { %v1070_v47 = vor.u32 %v1069_v43, %v1065_v42 }
 0x346   : > { %v1075_v49 = vsel %vm300_vm2, %v1070_v47, %v1074_v46 }
 0x347   : > { %1472 = vmatmul.mubr.msk.bf16.vlgmr.msra.gmra.mrb[8].mxu0 %vm538_vm7, %v1075_v49 }
 0x348   : > { %1476 = vmatpush3.bf16.msra.mxu0 %v1126_v48  ;;  %1477 = vmatprep.mubr.msk.bf16.mxu0 %vm1670_vm0, %v1669_v1 }
 0x349   : > { %1481 = vmatprep.subr.bf16.mxu0 %v1669_v1 }
 0x353   : > { %1478 = vmatmul.mubr.msk.bf16.vlgmr.msra.gmra.mrb[8].mxu0 %vm538_vm7, %v1062_v36 }
 0x354   : > { %1482 = vmatpush3.bf16.msra.mxu0 %v1178_v51  ;;  %1483 = vmatprep.mubr.msk.bf16.mxu0 %vm1670_vm0, %v1669_v1 }
 0x35f   : > { %1484 = vmatmul.mubr.msk.bf16.vlgmr.msra.gmra.mrb[8].mxu0 %vm538_vm7, %v1173_v45 }
 0x432   : > { %v1214_v55 = vpop.f32.mrb[8].mxu0 }
 0x433   : > { %v1227_v56 = vmul.f32 %v1226_v53, %v1214_v55  ;;  %v1485_v57 = vpop.f32.mrb[9].mxu0 }
 0x434   : > { %v1217_v58 = vpop.f32.mrb[10].mxu0 }
 0x435   : > { %v1233_v59 = vadd.f32 %v1232_v54, %v1227_v56  ;;  %v1228_v62 = vmul.f32 %v1226_v53, %v1217_v58  ;;  %v1486_v63 = vpop.f32.mrb[11].mxu0 }
 0x437   : > { %v1234_v4 = vadd.f32 %v1232_v54, %v1228_v62  ;;  %1247 = vrot.lane.b32.xlu0 %v1233_v59, %s1672_s13  ;;  %v1235_v1 = vsub.f32 0.0, %v1233_v59 }
 0x439   : > { %1249 = vrot.lane.b32.xlu1 %v1234_v4, %s1672_s13  ;;  %v1236_v5 = vsub.f32 0.0, %v1234_v4  ;;  %v1237_v6 = vmul.f32 1.442695, %v1235_v1 }
 0x43b   : > { %v1239_v7 = vmul.f32 1.442695, %v1236_v5  ;;  %1597 = vpow2.f32 %v1237_v6 }
 0x43d   : > { %1599 = vpow2.f32 %v1239_v7 }
 0x445   : > { %v1598_v25 = vpop.eup %1597 }
 0x446   : > { %v1241_v8 = vadd.f32 1.0, %v1598_v25 }
 0x447   : > { %v1600_v27 = vpop.eup %1599 }
 0x448   : > { %v1242_v9 = vadd.f32 1.0, %v1600_v27  ;;  %1601 = vrcp.f32 %v1241_v8 }
 0x44a   : > { %1603 = vrcp.f32 %v1242_v9 }
 0x452   : > { %v1602_v10 = vpop.eup %1601 }
 0x454   : > { %v1604_v0 = vpop.eup %1603 }
 0x4a9   : > { %v1248_v60 = vpop.permute.xlu0 %1247 }
 0x4aa   : > { %v1253_v61 = vmul.f32 %v1602_v10, %v1248_v60 }
 0x4ab   : > { %v1250_v11 = vpop.permute.xlu1 %1249 }
 0x4ac   : > { %v1255_v12 = vadd.f32 %v1253_v61, %v1779_v2  ;;  %v1254_v13 = vmul.f32 %v1604_v0, %v1250_v11 }
 0x4ae   : > { %1257 = vst.msk [vmem:[%s271_s17] sm:$0xff] %vm319_vm3, %v1255_v12  ;;  %v1256_v14 = vadd.f32 %v1254_v13, %v1781_v3 }
 0x4b0   : > { %1258 = vst.msk [vmem:[%s271_s17 + $0x8] sm:$0xff] %vm319_vm3, %v1256_v14 }
 0x4b1   : > { %1618 = shalt.err (!%p1615_p3)
}
 0x4b2   : > { %s1619_s9 = scalar_lea.hbm %s1949_s16, 256  ;;  %s1623_s15 = scalar_lea.hbm %s2004_s7, 512 }
 0x4b3   : > { %p1620_p4 = scmp.ne.s32.totalorder %s1949_s16, %s1619_s9  ;;  %p1624_p9 = scmp.lt.u32.totalorder %s1949_s16, %s2004_s7 }
 0x4b4   : > { %p1625_p10 = scmp.lt.u32.totalorder %s1623_s15, %s1619_s9  ;;  %p1627_p12 = scmp.lt.u32.totalorder %s1619_s9, %s1949_s16 }
 0x4b5   : > { %p1621_p7 = pnand %p1620_p4, %p1754_p5 }
 0x4b6   : > { %p1626_p11 = por %p1625_p10, %p1624_p9 }
 0x4b7   : > { %p1622_p8 = pneg %p1621_p7 }
 0x4b8   : > { %p1628_p13 = por %p1627_p12, %p1626_p11 }
 0x4ba   : > { %p1629_p0 = pnand %p1628_p13, %p1622_p8 }
 0x4bc   : > { %1632 = shalt.err (!%p1629_p0)
}
 0x4bd   : > { %s1674_s20 = smov 128   ;;  %s1675_s21 = smov 8  }
 0x4be   : > { %1533 = dma.vmem_to_hbm [thread:$0]  (%p1754_p5), %s1951_s18, 256, %s1949_s16, %s1956_s28, %s1674_s20, %s1674_s20, %s1675_s21  }
 0x4bf PF: > { %p1539_p1 = scmp.ge.s32.totalorder %s1667_s27, 2  ;;  %s1288_s22 = sand.u32 1, %s1655_s24  }
 0x4c0   : > { %s1289_s23 = scalar_lea.sflag [#allocation3], %s1288_s22 }
 0x4c1   : > { %p1536_p2 = pnand %p1539_p1, %p1758_p6 }
 0x4c3   : > { %1650 = dma.done.wait (!%p1536_p2), %s1289_s23, 256  }
 0x4c4   : > { %1652 = vsyncadd (!%p1536_p2), %s1289_s23, 4294967040  ;;  %p17_p3 = scmp.ge.s32.totalorder %s1741_s30, 4   ;;  %s2007_s24 = smov %s1659_s25 }
 0x4c5   : > { %s2008_s25 = smov %s1663_s26  ;;  %s2009_s26 = smov %s1752_s10 }
 0x4c6   : > { %s2010_s27 = smov %s1741_s30  ;;  %19 = sbr.rel (!%p17_p3) target bundleno = 3 (0x3), region = 83 }
 0x4cd   :  { %1294 = vsyncpa [#allocation3], 1 }
 0x4ce   :  { %1296 = vsyncpa [#allocation3 + $0x1], 1 }

</bundles_post_ra>
